<compile_context>
chip_gen: v6e
topology: v6e:2x2x1
jax: 0.10.0
libtpu: 0.0.40
codegen_flags: <defaults>
</compile_context>

<pallas_src>
import functools

import jax
import jax.numpy as jnp
from jax.experimental import pallas as pl
from jax.experimental.pallas import tpu as pltpu

EPS = 1e-5                      # PyTorch BatchNorm1d default
VMEM_LIMIT = 32 * 1024 * 1024   # explicit budget (see header); fits v5e/v6e/v7x


# --------------------------------------------------------------------------- #
# Kernel 1: BatchNorm1d batch statistics — single fused pass over (B*R, F).
# --------------------------------------------------------------------------- #
def _bn_stats_kernel(x_ref, gamma_ref, mean_ref, scale_ref, sum_ref, sq_ref,
                     *, n_rows, block_rows):
    i = pl.program_id(0)

    @pl.when(i == 0)
    def _():
        sum_ref[...] = jnp.zeros_like(sum_ref)
        sq_ref[...] = jnp.zeros_like(sq_ref)

    x = x_ref[...]                                            # (block_rows, F) f32
    # Mask rows past the end of the (possibly ragged) last block.
    row = jax.lax.broadcasted_iota(jnp.int32, x.shape, 0) + i * block_rows
    xm = jnp.where(row < n_rows, x, 0.0)
    sum_ref[...] += jnp.sum(xm, axis=0, keepdims=True)
    sq_ref[...] += jnp.sum(xm * xm, axis=0, keepdims=True)

    @pl.when(i == pl.num_programs(0) - 1)
    def _():
        inv_n = 1.0 / n_rows
        mean = sum_ref[...] * inv_n
        # Single-pass variance; clamp guards cancellation for large-magnitude inputs.
        var = jnp.maximum(sq_ref[...] * inv_n - mean * mean, 0.0)
        mean_ref[...] = mean
        scale_ref[...] = gamma_ref[...] * jax.lax.rsqrt(var + EPS)


# --------------------------------------------------------------------------- #
# Kernel 2: normalize + fused (embed Linear ∘ concat ∘ 3-layer MLP), B-gridded.
# --------------------------------------------------------------------------- #
def _mlp_kernel(xf_ref, click_ref, mean_ref, scale_ref,
                wc_ref, wf_ref, b1_ref, w2_ref, b2_ref, w3_ref, b3_ref,
                out_ref, *, matmul_dtype):
    # BN normalize (beta folded into b1'); statistics math stays f32.
    xs = (xf_ref[...] - mean_ref[...]) * scale_ref[...]       # (bt, R*F) f32

    # Fused embed Linear + concat + first MLP layer: exactly two MXU matmuls.
    h = (jnp.dot(click_ref[...].astype(matmul_dtype), wc_ref[...],
                 preferred_element_type=jnp.float32)
         + jnp.dot(xs.astype(matmul_dtype), wf_ref[...],
                   preferred_element_type=jnp.float32)
         + b1_ref[...])
    h = jnp.maximum(h, 0.0)                                   # fn() := nn.ReLU

    h = jnp.maximum(
        jnp.dot(h.astype(matmul_dtype), w2_ref[...],
                preferred_element_type=jnp.float32) + b2_ref[...], 0.0)
    out = (jnp.dot(h.astype(matmul_dtype), w3_ref[...],
                   preferred_element_type=jnp.float32) + b3_ref[...])
    # TODO(synk): O=1 gives lane-sparse (masked) output stores; emit (O, B) if this
    # ever matters — negligible at these output sizes.
    out_ref[...] = out.astype(out_ref.dtype)


def discriminator_forward(click_logs, rankings, params, *,
                          matmul_dtype=jnp.bfloat16, b_tile=128, row_tile=256):
    """click_logs: (B, R); rankings: (B, R, F). Weights stored (fan_in, fan_out)."""
    B, R, F = rankings.shape
    E = params["we"].shape[1]
    H = params["w1"].shape[1]
    O = params["w3"].shape[1]
    hp = jax.lax.Precision.HIGHEST

    # ---- wrapper-side layout / dtype / weight fusion ----
    x2d = jnp.asarray(rankings, jnp.float32).reshape(B * R, F)   # stats view (free)
    xf = x2d.reshape(B, R * F)                                   # MLP view (free)
    click = jnp.asarray(click_logs, jnp.float32)
    gamma = params["gamma"].astype(jnp.float32).reshape(1, F)

    w1 = params["w1"].astype(jnp.float32)
    w1_click = w1[:R, :]                                         # (R, H)
    w1_emb = w1[R:, :].reshape(R, E, H)                          # per-rank blocks
    we = params["we"].astype(jnp.float32)
    be = params["be"].astype(jnp.float32)
    beta = params["beta"].astype(jnp.float32)

    #   Wf[r*F+f, h] = sum_e we[f, e] * w1_emb[r, e, h]
    wf = jnp.einsum("fe,reh->rfh", we, w1_emb, precision=hp).reshape(R * F, H)
    b1f = (params["b1"].astype(jnp.float32)
           + jnp.einsum("e,reh->h", be, w1_emb, precision=hp)
           + jnp.dot(jnp.tile(beta, R), wf, precision=hp)).reshape(1, H)

    # ---- pass 1: BN batch statistics ----
    BR = B * R
    rt = row_tile if BR >= row_tile else BR
    mean, scale = pl.pallas_call(
        functools.partial(_bn_stats_kernel, n_rows=BR, block_rows=rt),
        out_shape=(jax.ShapeDtypeStruct((1, F), jnp.float32),
                   jax.ShapeDtypeStruct((1, F), jnp.float32)),
        grid_spec=pltpu.PrefetchScalarGridSpec(
            num_scalar_prefetch=0, grid=(pl.cdiv(BR, rt),),
            in_specs=[pl.BlockSpec((rt, F), lambda i: (i, 0)),
                      pl.BlockSpec((1, F), lambda i: (0, 0))],
            out_specs=(pl.BlockSpec((1, F), lambda i: (0, 0)),
                       pl.BlockSpec((1, F), lambda i: (0, 0))),
            scratch_shapes=[pltpu.VMEM((1, F), jnp.float32),
                            pltpu.VMEM((1, F), jnp.float32)]),
        compiler_params=pltpu.CompilerParams(
            dimension_semantics=("arbitrary",), vmem_limit_bytes=VMEM_LIMIT),
    )(x2d, gamma)

    # Tiny (1, F) -> (1, R*F) re-tiling of the stat rows (cheap XLA op).
    mean_t = jnp.tile(mean, (1, R))
    scale_t = jnp.tile(scale, (1, R))

    # ---- pass 2: normalize + fused MLP, gridded over B ----
    bt = b_tile if B >= b_tile else B
    blk = lambda i: (i, 0)      # batch-blocked
    inv = lambda i: (0, 0)      # grid-invariant: weights / stat rows stay resident

    args = (
        xf, click, mean_t, scale_t,
        w1_click.astype(matmul_dtype), wf.astype(matmul_dtype), b1f,
        params["w2"].astype(matmul_dtype),
        params["b2"].astype(jnp.float32).reshape(1, H),
        params["w3"].astype(matmul_dtype),
        params["b3"].astype(jnp.float32).reshape(1, O),
    )
    in_specs = [
        pl.BlockSpec((bt, R * F), blk),      # xf
        pl.BlockSpec((bt, R), blk),          # click
        pl.BlockSpec((1, R * F), inv),       # mean (tiled)
        pl.BlockSpec((1, R * F), inv),       # scale (tiled)
        pl.BlockSpec((R, H), inv),           # Wc
        pl.BlockSpec((R * F, H), inv),       # Wf
        pl.BlockSpec((1, H), inv),           # b1'
        pl.BlockSpec((H, H), inv),           # w2
        pl.BlockSpec((1, H), inv),           # b2
        pl.BlockSpec((H, O), inv),           # w3
        pl.BlockSpec((1, O), inv),           # b3
    ]
    return pl.pallas_call(
        functools.partial(_mlp_kernel, matmul_dtype=matmul_dtype),
        out_shape=jax.ShapeDtypeStruct((B, O), jnp.float32),
        grid_spec=pltpu.PrefetchScalarGridSpec(
            num_scalar_prefetch=0, grid=(pl.cdiv(B, bt),),
            in_specs=in_specs,
            out_specs=pl.BlockSpec((bt, O), blk)),
        compiler_params=pltpu.CompilerParams(
            dimension_semantics=("parallel",), vmem_limit_bytes=VMEM_LIMIT),
    )(*args)


def _reference_forward(click_logs, rankings, params):
    B, R, F = rankings.shape
    x = rankings.reshape(-1, F)
    mean = jnp.mean(x, axis=0)
    var = jnp.mean((x - mean) ** 2, axis=0)
    xn = (x - mean) / jnp.sqrt(var + EPS) * params["gamma"] + params["beta"]
    emb = xn.reshape(B, R, F) @ params["we"] + params["be"]
    data = jnp.concatenate([click_logs, emb.reshape(B, -1)], axis=1)
    h = jax.nn.relu(data @ params["w1"] + params["b1"])
    h = jax.nn.relu(h @ params["w2"] + params["b2"])
    return h @ params["w3"] + params["b3"]


if __name__ == "__main__":
    # Small shapes consistent with the module: feature_size=16, embed_size=8,
    # rank_cut=4, hidden_size=32, output_size=1, batch=8.
    B, R, F, E, H, O = 8, 4, 16, 8, 32, 1
    in_size = R * E + R

    key = jax.random.PRNGKey(0)
    ks = jax.random.split(key, 12)

    def make_linear(kw, kb, fan_in, fan_out):
        bound = 1.0 / (fan_in ** 0.5)
        w = jax.random.uniform(kw, (fan_in, fan_out), jnp.float32, -bound, bound)
        b = jax.random.uniform(kb, (fan_out,), jnp.float32, -bound, bound)
        return w, b

    we, be = make_linear(ks[0], ks[1], F, E)
    w1, b1 = make_linear(ks[2], ks[3], in_size, H)
    w2, b2 = make_linear(ks[4], ks[5], H, H)
    w3, b3 = make_linear(ks[6], ks[7], H, O)
    params = dict(
        gamma=jax.random.uniform(ks[10], (F,), jnp.float32, 0.5, 1.5),
        beta=jax.random.uniform(ks[11], (F,), jnp.float32, -0.5, 0.5),
        we=we, be=be, w1=w1, b1=b1, w2=w2, b2=b2, w3=w3, b3=b3,
    )

    rankings = jax.random.normal(ks[8], (B, R, F), jnp.float32)
    click_logs = (jax.random.uniform(ks[9], (B, R)) < 0.3).astype(jnp.float32)

    ref = _reference_forward(click_logs, rankings, params)

    # Exact-f32 matmul path (tight tolerance; only reassociation differs).
    out_f32 = discriminator_forward(click_logs, rankings, params,
                                    matmul_dtype=jnp.float32)
    jax.block_until_ready(out_f32)
    assert out_f32.shape == (B, O)
    assert jnp.allclose(out_f32, ref, rtol=1e-4, atol=1e-4), \
        float(jnp.max(jnp.abs(out_f32 - ref)))

    # Default bf16-operand path (MXU-native on v6e/v7x), f32 accumulation.
    out_bf16 = discriminator_forward(click_logs, rankings, params)
    jax.block_until_ready(out_bf16)
    assert out_bf16.shape == (B, O)
    assert jnp.allclose(out_bf16, ref, rtol=5e-2, atol=5e-2), \
        float(jnp.max(jnp.abs(out_bf16 - ref)))

    print("KERNEL_OK")
</pallas_src>

<mosaic_0001>
module attributes {stable_mosaic.version = 11 : i64} {
  func.func @_bn_stats_kernel(%arg0: i32, %arg1: memref<32x16xf32, #tpu.memory_space<vmem>>, %arg2: memref<1x16xf32, #tpu.memory_space<vmem>>, %arg3: memref<1x16xf32, #tpu.memory_space<vmem>>, %arg4: memref<1x16xf32, #tpu.memory_space<vmem>>, %arg5: memref<1x16xf32, #tpu.memory_space<vmem>>, %arg6: memref<1x16xf32, #tpu.memory_space<vmem>>) attributes {dimension_semantics = [#tpu.dimension_semantics<arbitrary>], iteration_bounds = array<i64: 1>, scalar_prefetch = 0 : i64, scratch_operands = 2 : i64, tpu.core_type = #tpu.core_type<tc>, window_params = [{transform_indices = @transform_0, window_bounds = array<i64: 32, 16>}, {pipeline_mode = #tpu.pipeline_mode<synchronous>, transform_indices = @transform_1, window_bounds = array<i64: 1, 16>}, {pipeline_mode = #tpu.pipeline_mode<synchronous>, transform_indices = @transform_2, window_bounds = array<i64: 1, 16>}, {pipeline_mode = #tpu.pipeline_mode<synchronous>, transform_indices = @transform_3, window_bounds = array<i64: 1, 16>}]} {
    %c0_i32 = arith.constant 0 : i32
    %0 = arith.cmpi eq, %arg0, %c0_i32 : i32
    %1 = arith.extui %0 : i1 to i32
    %c0_i32_0 = arith.constant 0 : i32
    %2 = arith.cmpi ne, %1, %c0_i32_0 : i32
    scf.if %2 {
      %cst_15 = arith.constant 0.000000e+00 : f32
      %26 = vector.broadcast %cst_15 : f32 to vector<1x16xf32>
      %c0_16 = arith.constant 0 : index
      %c0_17 = arith.constant 0 : index
      %27 = vector.load %arg5[%c0_16, %c0_17] : memref<1x16xf32, #tpu.memory_space<vmem>>, vector<1x16xf32>
      tpu.vector_store %arg5[%c0_16, %c0_17], %26 {strides = array<i32>} : memref<1x16xf32, #tpu.memory_space<vmem>>, vector<1x16xf32>,
      %cst_18 = arith.constant 0.000000e+00 : f32
      %28 = vector.broadcast %cst_18 : f32 to vector<1x16xf32>
      %c0_19 = arith.constant 0 : index
      %c0_20 = arith.constant 0 : index
      %29 = vector.load %arg6[%c0_19, %c0_20] : memref<1x16xf32, #tpu.memory_space<vmem>>, vector<1x16xf32>
      tpu.vector_store %arg6[%c0_19, %c0_20], %28 {strides = array<i32>} : memref<1x16xf32, #tpu.memory_space<vmem>>, vector<1x16xf32>,
    } else {
    }
    %c0 = arith.constant 0 : index
    %c0_1 = arith.constant 0 : index
    %3 = vector.load %arg1[%c0, %c0_1] : memref<32x16xf32, #tpu.memory_space<vmem>>, vector<32x16xf32>
    %4 = tpu.iota {dimensions = array<i32: 0>} : vector<32x16xi32>
    %c32_i32 = arith.constant 32 : i32
    %5 = arith.muli %arg0, %c32_i32 : i32
    %6 = vector.broadcast %5 : i32 to vector<32x16xi32>
    %7 = arith.addi %4, %6 : vector<32x16xi32>
    %c32_i32_2 = arith.constant 32 : i32
    %8 = vector.broadcast %c32_i32_2 : i32 to vector<32x16xi32>
    %9 = arith.cmpi slt, %7, %8 : vector<32x16xi32>
    %cst = arith.constant 0.000000e+00 : f32
    %10 = vector.broadcast %cst : f32 to vector<32x16xf32>
    %11 = arith.select %9, %3, %10 : vector<32x16xi1>, vector<32x16xf32>
    %c0_3 = arith.constant 0 : index
    %c0_4 = arith.constant 0 : index
    %12 = vector.load %arg5[%c0_3, %c0_4] : memref<1x16xf32, #tpu.memory_space<vmem>>, vector<1x16xf32>
    %cst_5 = arith.constant dense<0.000000e+00> : vector<16xf32>
    %13 = vector.multi_reduction <add>, %11, %cst_5 [0] : vector<32x16xf32> to vector<16xf32>
    %14 = vector.shape_cast %13 : vector<16xf32> to vector<1x16xf32>
    %15 = arith.addf %12, %14 : vector<1x16xf32>
    %c0_6 = arith.constant 0 : index
    %c0_7 = arith.constant 0 : index
    %16 = vector.load %arg5[%c0_6, %c0_7] : memref<1x16xf32, #tpu.memory_space<vmem>>, vector<1x16xf32>
    tpu.vector_store %arg5[%c0_6, %c0_7], %15 {strides = array<i32>} : memref<1x16xf32, #tpu.memory_space<vmem>>, vector<1x16xf32>,
    %c0_8 = arith.constant 0 : index
    %c0_9 = arith.constant 0 : index
    %17 = vector.load %arg6[%c0_8, %c0_9] : memref<1x16xf32, #tpu.memory_space<vmem>>, vector<1x16xf32>
    %18 = arith.mulf %11, %11 : vector<32x16xf32>
    %cst_10 = arith.constant dense<0.000000e+00> : vector<16xf32>
    %19 = vector.multi_reduction <add>, %18, %cst_10 [0] : vector<32x16xf32> to vector<16xf32>
    %20 = vector.shape_cast %19 : vector<16xf32> to vector<1x16xf32>
    %21 = arith.addf %17, %20 : vector<1x16xf32>
    %c0_11 = arith.constant 0 : index
    %c0_12 = arith.constant 0 : index
    %22 = vector.load %arg6[%c0_11, %c0_12] : memref<1x16xf32, #tpu.memory_space<vmem>>, vector<1x16xf32>
    tpu.vector_store %arg6[%c0_11, %c0_12], %21 {strides = array<i32>} : memref<1x16xf32, #tpu.memory_space<vmem>>, vector<1x16xf32>,
    %c0_i32_13 = arith.constant 0 : i32
    %23 = arith.cmpi eq, %arg0, %c0_i32_13 : i32
    %24 = arith.extui %23 : i1 to i32
    %c0_i32_14 = arith.constant 0 : i32
    %25 = arith.cmpi ne, %24, %c0_i32_14 : i32
    scf.if %25 {
      %c0_15 = arith.constant 0 : index
      %c0_16 = arith.constant 0 : index
      %26 = vector.load %arg5[%c0_15, %c0_16] : memref<1x16xf32, #tpu.memory_space<vmem>>, vector<1x16xf32>
      %cst_17 = arith.constant 3.125000e-02 : f32
      %27 = vector.broadcast %cst_17 : f32 to vector<1x16xf32>
      %28 = arith.mulf %26, %27 : vector<1x16xf32>
      %c0_18 = arith.constant 0 : index
      %c0_19 = arith.constant 0 : index
      %29 = vector.load %arg6[%c0_18, %c0_19] : memref<1x16xf32, #tpu.memory_space<vmem>>, vector<1x16xf32>
      %cst_20 = arith.constant 3.125000e-02 : f32
      %30 = vector.broadcast %cst_20 : f32 to vector<1x16xf32>
      %31 = arith.mulf %29, %30 : vector<1x16xf32>
      %32 = arith.mulf %28, %28 : vector<1x16xf32>
      %33 = arith.subf %31, %32 : vector<1x16xf32>
      %cst_21 = arith.constant 0.000000e+00 : f32
      %34 = vector.broadcast %cst_21 : f32 to vector<1x16xf32>
      %35 = arith.maximumf %33, %34 : vector<1x16xf32>
      %c0_22 = arith.constant 0 : index
      %c0_23 = arith.constant 0 : index
      %36 = vector.load %arg3[%c0_22, %c0_23] : memref<1x16xf32, #tpu.memory_space<vmem>>, vector<1x16xf32>
      tpu.vector_store %arg3[%c0_22, %c0_23], %28 {strides = array<i32>} : memref<1x16xf32, #tpu.memory_space<vmem>>, vector<1x16xf32>,
      %c0_24 = arith.constant 0 : index
      %c0_25 = arith.constant 0 : index
      %37 = vector.load %arg2[%c0_24, %c0_25] : memref<1x16xf32, #tpu.memory_space<vmem>>, vector<1x16xf32>
      %cst_26 = arith.constant 9.99999974E-6 : f32
      %38 = vector.broadcast %cst_26 : f32 to vector<1x16xf32>
      %39 = arith.addf %35, %38 : vector<1x16xf32>
      %40 = math.rsqrt %39 : vector<1x16xf32>
      %41 = arith.mulf %37, %40 : vector<1x16xf32>
      %c0_27 = arith.constant 0 : index
      %c0_28 = arith.constant 0 : index
      %42 = vector.load %arg4[%c0_27, %c0_28] : memref<1x16xf32, #tpu.memory_space<vmem>>, vector<1x16xf32>
      tpu.vector_store %arg4[%c0_27, %c0_28], %41 {strides = array<i32>} : memref<1x16xf32, #tpu.memory_space<vmem>>, vector<1x16xf32>,
    } else {
    }
    return
  }
  func.func @transform_0(%arg0: i32) -> (i32, i32) {
    %c0_i32 = arith.constant 0 : i32
    %c0_i32_0 = arith.constant 0 : i32
    return %arg0, %c0_i32 : i32, i32
  }
  func.func @transform_1(%arg0: i32) -> (i32, i32) {
    %c0_i32 = arith.constant 0 : i32
    %c0_i32_0 = arith.constant 0 : i32
    %c0_i32_1 = arith.constant 0 : i32
    return %c0_i32, %c0_i32_0 : i32, i32
  }
  func.func @transform_2(%arg0: i32) -> (i32, i32) {
    %c0_i32 = arith.constant 0 : i32
    %c0_i32_0 = arith.constant 0 : i32
    %c0_i32_1 = arith.constant 0 : i32
    return %c0_i32, %c0_i32_0 : i32, i32
  }
  func.func @transform_3(%arg0: i32) -> (i32, i32) {
    %c0_i32 = arith.constant 0 : i32
    %c0_i32_0 = arith.constant 0 : i32
    %c0_i32_1 = arith.constant 0 : i32
    return %c0_i32, %c0_i32_0 : i32, i32
  }
}

</mosaic_0001>

<bundles_post_ra>
// kernel: tpu_custom_call.1
= control target key start
LH: loop header
LB: loop body
LE: loop exit
PB: predicated region body
PF: predicated region fallthrough
CT: control target
= control target key end

     0   :  { %9 = vsyncpa [#allocation5], 0  ;;  %vm19_vm0 = vcmask 122880   ;;  %vm46_vm1 = vcmask 130048   ;;  %v176_v3 = vmov 0.0   ;;  %s234_s0 = inlined_call_operand.vmem [shape: f32[32,16], index: 0, kind: input, shape index: {}]   ;;  %s235_s1 = inlined_call_operand.vmem [shape: f32[1,16], index: 1, kind: input, shape index: {}]   ;;  %s236_s2 = inlined_call_operand.hbm [shape: f32[1,16], index: 2, kind: output, shape index: {0}]   ;;  %s237_s3 = inlined_call_operand.hbm [shape: f32[1,16], index: 3, kind: output, shape index: {1}]  }
   0x1   :  { %v22_v0 = vld [vmem:[%s234_s0] sm:$0xff]  ;;  %v23_v1 = vld [vmem:[%s234_s0 + $0x8] sm:$0xff]  ;;  %v24_v2 = vld [vmem:[%s234_s0 + $0x10] sm:$0xff]  ;;  %20 = vst.msk [vmem:[#allocation2] sm:$0x1] %vm19_vm0, %v176_v3 }
   0x2   :  { %21 = vst.msk [vmem:[#allocation3] sm:$0x1] %vm19_vm0, %v176_v3  ;;  %v25_v4 = vld [vmem:[%s234_s0 + $0x18] sm:$0xff]  ;;  %v47_v5 = vsel %vm46_vm1, %v22_v0, 0.0  ;;  %v48_v6 = vsel %vm46_vm1, %v23_v1, 0.0  ;;  %v50_v7 = vsel %vm46_vm1, %v24_v2, 0.0  ;;  %v64_v8 = vmul.f32 %v22_v0, %v22_v0 }
   0x3   :  { %v49_v9 = vadd.f32 %v48_v6, %v47_v5  ;;  %v65_v10 = vmul.f32 %v23_v1, %v23_v1  ;;  %v66_v11 = vmul.f32 %v24_v2, %v24_v2 }
   0x4   :  { %10 = vsyncpa [#allocation7], 0  ;;  %v52_v12 = vsel %vm46_vm1, %v25_v4, 0.0  ;;  %v67_v13 = vmul.f32 %v25_v4, %v25_v4  ;;  %v68_v14 = vsel %vm46_vm1, %v64_v8, 0.0  ;;  %s177_s0 = smov [#allocation4]  }
   0x5   :  { %v51_v15 = vadd.f32 %v50_v7, %v49_v9  ;;  %v69_v16 = vsel %vm46_vm1, %v65_v10, 0.0  ;;  %v71_v17 = vsel %vm46_vm1, %v66_v11, 0.0  ;;  %s105_s20 = sshll.u32 %s177_s0, 4  ;;  %s106_s20 = int_to_ptr.vmem [resolvable:$true] %s105_s20 }
   0x6   :  { %v70_v18 = vadd.f32 %v69_v16, %v68_v14  ;;  %v73_v20 = vsel %vm46_vm1, %v67_v13, 0.0  ;;  %s132_s21 = scalar_lea.vmem %s106_s20, 16  ;;  %s136_s22 = scalar_lea.vmem %s106_s20, 32 }
   0x7   :  { %v53_v19 = vadd.f32 %v52_v12, %v51_v15  ;;  %p133_p0 = scmp.ne.s32.totalorder %s106_s20, %s132_s21  ;;  %p137_p1 = scmp.lt.s32.totalorder %s106_s20, %s106_s20 }
   0x8   :  { %v72_v21 = vadd.f32 %v71_v17, %v70_v18  ;;  %v45_v31 = vld [vmem:[#allocation2] sm:$0x1]  ;;  %p138_p2 = scmp.lt.s32.totalorder %s136_s22, %s132_s21 }
   0x9   :  { %v54_v22 = vrot.slane %v53_v19, 4  ;;  %v63_v36 = vld [vmem:[#allocation3] sm:$0x1] }
   0xa   :  { %v74_v23 = vadd.f32 %v73_v20, %v72_v21  ;;  %p139_p3 = por %p138_p2, %p137_p1 }
   0xb   :  { %v55_v24 = vadd.f32 %v54_v22, %v53_v19 }
   0xc   :  { %v75_v25 = vrot.slane %v74_v23, 4  ;;  %p140_p4 = pnand %p139_p3, %p133_p0 }
   0xd   :  { %v56_v26 = vrot.slane %v55_v24, 2 }
   0xe   :  { %v76_v27 = vadd.f32 %v75_v25, %v74_v23 }
   0xf   :  { %v57_v28 = vadd.f32 %v56_v26, %v55_v24 }
  0x10   :  { %v77_v29 = vrot.slane %v76_v27, 2 }
  0x11   :  { %v58_v30 = vrot.slane %v57_v28, 1 }
  0x12   :  { %v78_v32 = vadd.f32 %v77_v29, %v76_v27 }
  0x13   :  { %v59_v33 = vadd.f32 %v58_v30, %v57_v28 }
  0x14   :  { %v79_v34 = vrot.slane %v78_v32, 1 }
  0x15   :  { %v60_v35 = vadd.f32 %v59_v33, %v45_v31 }
  0x16   :  { %v80_v37 = vadd.f32 %v79_v34, %v78_v32 }
  0x17   :  { %62 = vst.msk [vmem:[#allocation2] sm:$0x1] %vm19_vm0, %v60_v35 }
  0x18   :  { %v81_v38 = vadd.f32 %v80_v37, %v63_v36 }
  0x1a   :  { %82 = vst.msk [vmem:[#allocation3] sm:$0x1] %vm19_vm0, %v81_v38 }
  0x1e   :  { %v86_v39 = vld [vmem:[#allocation2] sm:$0x1] }
  0x1f   :  { %v87_v40 = vmul.f32 0.03125, %v86_v39 }
  0x21   :  { %v88_v41 = vld [vmem:[#allocation3] sm:$0x1]  ;;  %v90_v42 = vmul.f32 %v87_v40, %v87_v40  ;;  %93 = vst.msk [vmem:[#allocation4] sm:$0x1] %vm19_vm0, %v87_v40 }
  0x22   :  { %v89_v43 = vmul.f32 0.03125, %v88_v41 }
  0x23   :  { %143 = shalt.err (!%p140_p4)
}
  0x24   :  { %108 = dma.vmem_to_hbm [thread:$0]  %s106_s20, 16, %s236_s2, [#allocation5]   ;;  %v91_v44 = vsub.f32 %v89_v43, %v90_v42  ;;  %v94_v47 = vld [vmem:[%s235_s1] sm:$0x1] }
  0x25   :  { %s178_s27 = smov [#allocation6]  }
  0x26   :  { %v92_v45 = vmax.f32 %v91_v44, 0.0  ;;  %s115_s28 = sshll.u32 %s178_s27, 4  ;;  %s116_s28 = int_to_ptr.vmem [resolvable:$true] %s115_s28 }
  0x27   :  { %s152_s29 = scalar_lea.vmem %s116_s28, 16  ;;  %s156_s30 = scalar_lea.vmem %s116_s28, 32 }
  0x28   :  { %v95_v46 = vadd.f32 1e-05, %v92_v45  ;;  %p153_p5 = scmp.ne.s32.totalorder %s116_s28, %s152_s29  ;;  %p157_p6 = scmp.lt.s32.totalorder %s116_s28, %s116_s28 }
  0x29   :  { %p158_p7 = scmp.lt.s32.totalorder %s156_s30, %s152_s29 }
  0x2a   :  { %130 = vrsqrt.f32 %v95_v46 }
  0x2b   :  { %p159_p8 = por %p158_p7, %p157_p6 }
  0x2d   :  { %p160_p9 = pnand %p159_p8, %p153_p5 }
  0x37   :  { %v131_v48 = vpop.eup %130 }
  0x38   :  { %v97_v49 = vmul.f32 %v131_v48, %v94_v47 }
  0x3a   :  { %98 = vst.msk [vmem:[#allocation6] sm:$0x1] %vm19_vm0, %v97_v49 }
  0x3b   :  { %163 = shalt.err (!%p160_p9)
}
  0x3c   :  { %118 = dma.vmem_to_hbm [thread:$0]  %s116_s28, 16, %s237_s3, [#allocation7]  }
  0x3d   :  { %172 = dma.done.wait [#allocation5], 16  }
  0x3e   :  { %173 = vsyncadd [#allocation5], 4294967280 }
  0x3f   :  { %174 = dma.done.wait [#allocation7], 16  }
  0x40   :  { %175 = vsyncadd [#allocation7], 4294967280 }
  0x41   :  { %125 = vsyncpa [#allocation5], 1 }
  0x42   :  { %126 = vsyncpa [#allocation7], 1 }

</bundles_post_ra>
